<compile_context>
chip_gen: v6e
topology: v6e:2x2x1
jax: 0.10.0
libtpu: 0.0.40
codegen_flags: <defaults>
</compile_context>

<pallas_src>
import functools
import math

import jax
import jax.numpy as jnp
from jax.experimental import pallas as pl
from jax.experimental.pallas import tpu as pltpu

LANES = 128
ACC_ROWS = 32                 # resident accumulator block: (32,128) f32 = 4 vregs
BLOCK_BYTES = 2 * 1024 * 1024  # ~2 MiB per input per pipeline buffer
_LN2 = float(math.log(2.0))


def _logcosh_kernel(p_ref, t_ref, o_ref, *, rows):
    k = pl.program_id(0)
    last = pl.num_programs(0) - 1

    # Output block is resident across the "arbitrary" grid axis -> accumulator.
    @pl.when(k == 0)
    def _init():
        o_ref[...] = jnp.zeros_like(o_ref)

    block_rows = p_ref.shape[0]

    d = p_ref[...].astype(jnp.float32) - t_ref[...].astype(jnp.float32)
    ad = jnp.abs(d)
    # Numerically stable log(cosh(d)) = |d| + log1p(exp(-2|d|)) - log(2).
    val = ad + jnp.log1p(jnp.exp(-2.0 * ad)) - _LN2

    def accumulate(v):
        # Sublane-group partial sum (block_rows,128) -> (ACC_ROWS,128):
        # pure VPU adds into 4 independent accumulator vregs.
        o_ref[...] += v.reshape(block_rows // ACC_ROWS, ACC_ROWS, LANES).sum(axis=0)

    # Interior blocks: fully in-bounds, no mask on the hot path.
    @pl.when(k != last)
    def _interior():
        accumulate(val)

    # Last block only: mask rows past the logical end (partial edge block).
    # NOTE: keep this a select (jnp.where); garbage rows may hold NaN/Inf and
    # a multiply-by-0 mask would leak NaN.
    @pl.when(k == last)
    def _edge():
        row_ids = k * block_rows + jax.lax.broadcasted_iota(
            jnp.int32, (block_rows, LANES), 0)
        accumulate(jnp.where(row_ids < rows, val, 0.0))


def logcosh_loss(pred: jax.Array, true: jax.Array) -> jax.Array:
    """sum(log(cosh(pred - true))) computed in a Pallas TPU kernel."""
    assert pred.shape == true.shape, "pred/true must have the same shape"
    out_dtype = jnp.promote_types(pred.dtype, true.dtype)
    if not jnp.issubdtype(out_dtype, jnp.floating):
        out_dtype = jnp.float32

    n = pred.size
    if n == 0:
        return jnp.zeros((), out_dtype)

    p = pred.reshape(-1)
    t = true.reshape(-1)

    rows = n // LANES
    tail = n - rows * LANES

    total = jnp.zeros((), jnp.float32)

    if tail:
        # Tiny ragged tail (<128 elements): plain jnp, avoids any full-tensor
        # pad/copy for unaligned sizes.
        pt = p[rows * LANES:].astype(jnp.float32)
        tt = t[rows * LANES:].astype(jnp.float32)
        adt = jnp.abs(pt - tt)
        total = total + jnp.sum(adt + jnp.log1p(jnp.exp(-2.0 * adt)) - _LN2)

    if rows:
        if tail:
            p_body = p[:rows * LANES]
            t_body = t[:rows * LANES]
        else:
            p_body = p
            t_body = t
        p2 = p_body.reshape(rows, LANES)
        t2 = t_body.reshape(rows, LANES)

        # Byte-budget tile: ~2 MiB per input per buffer (4096 f32 rows,
        # 8192 bf16 rows), rounded to the ACC_ROWS granule.
        itemsize = max(jnp.dtype(p2.dtype).itemsize, jnp.dtype(t2.dtype).itemsize)
        target_rows = BLOCK_BYTES // (LANES * itemsize)
        target_rows = max(ACC_ROWS, (target_rows // ACC_ROWS) * ACC_ROWS)
        rows_padded = ((rows + ACC_ROWS - 1) // ACC_ROWS) * ACC_ROWS
        block_rows = min(target_rows, rows_padded)
        num_blocks = pl.cdiv(rows, block_rows)

        kernel = functools.partial(_logcosh_kernel, rows=rows)

        partials = pl.pallas_call(
            kernel,
            out_shape=jax.ShapeDtypeStruct((ACC_ROWS, LANES), jnp.float32),
            grid_spec=pltpu.PrefetchScalarGridSpec(
                num_scalar_prefetch=0,
                grid=(num_blocks,),
                in_specs=[
                    pl.BlockSpec((block_rows, LANES), lambda k: (k, 0)),
                    pl.BlockSpec((block_rows, LANES), lambda k: (k, 0)),
                ],
                out_specs=pl.BlockSpec((ACC_ROWS, LANES), lambda k: (0, 0)),
            ),
            compiler_params=pltpu.CompilerParams(
                dimension_semantics=("arbitrary",),
            ),
            cost_estimate=pl.CostEstimate(
                flops=int(6 * rows * LANES),
                transcendentals=int(2 * rows * LANES),
                bytes_accessed=int(p2.nbytes + t2.nbytes + ACC_ROWS * LANES * 4),
            ),
        )(p2, t2)

        # Tiny final cross-lane reduction (32x128) outside the hot loop.
        total = total + jnp.sum(partials)

    return total.astype(out_dtype)


if __name__ == "__main__":
    key = jax.random.PRNGKey(0)
    k1, k2 = jax.random.split(key)
    # Small shapes consistent with a typical NCHW regression target.
    pred = jax.random.normal(k1, (2, 4, 16, 16), dtype=jnp.float32)
    true = jax.random.normal(k2, (2, 4, 16, 16), dtype=jnp.float32)

    out = logcosh_loss(pred, true)
    jax.block_until_ready(out)

    # Reference check (same math as torch.sum(torch.log(torch.cosh(pred - true)))).
    ref = jnp.sum(jnp.log(jnp.cosh(pred - true)))
    assert jnp.allclose(out, ref, rtol=1e-4, atol=1e-3), (out, ref)

    print("KERNEL_OK")
</pallas_src>

<mosaic_0001>
module attributes {stable_mosaic.version = 11 : i64} {
  func.func @_logcosh_kernel(%arg0: i32, %arg1: memref<32x128xf32, #tpu.memory_space<vmem>>, %arg2: memref<32x128xf32, #tpu.memory_space<vmem>>, %arg3: memref<32x128xf32, #tpu.memory_space<vmem>>) attributes {dimension_semantics = [#tpu.dimension_semantics<arbitrary>], iteration_bounds = array<i64: 1>, scalar_prefetch = 0 : i64, scratch_operands = 0 : i64, tpu.core_type = #tpu.core_type<tc>, window_params = [{transform_indices = @transform_0, window_bounds = array<i64: 32, 128>}, {transform_indices = @transform_1, window_bounds = array<i64: 32, 128>}, {pipeline_mode = #tpu.pipeline_mode<synchronous>, transform_indices = @transform_2, window_bounds = array<i64: 32, 128>}]} {
    %c0_i32 = arith.constant 0 : i32
    %0 = arith.cmpi eq, %arg0, %c0_i32 : i32
    %1 = arith.extui %0 : i1 to i32
    %c0_i32_0 = arith.constant 0 : i32
    %2 = arith.cmpi ne, %1, %c0_i32_0 : i32
    scf.if %2 {
      %cst_9 = arith.constant 0.000000e+00 : f32
      %20 = vector.broadcast %cst_9 : f32 to vector<32x128xf32>
      %c0_10 = arith.constant 0 : index
      %c0_11 = arith.constant 0 : index
      %21 = vector.load %arg3[%c0_10, %c0_11] : memref<32x128xf32, #tpu.memory_space<vmem>>, vector<32x128xf32>
      tpu.vector_store %arg3[%c0_10, %c0_11], %20 {strides = array<i32>} : memref<32x128xf32, #tpu.memory_space<vmem>>, vector<32x128xf32>,
    } else {
    }
    %c0 = arith.constant 0 : index
    %c0_1 = arith.constant 0 : index
    %3 = vector.load %arg1[%c0, %c0_1] : memref<32x128xf32, #tpu.memory_space<vmem>>, vector<32x128xf32>
    %c0_2 = arith.constant 0 : index
    %c0_3 = arith.constant 0 : index
    %4 = vector.load %arg2[%c0_2, %c0_3] : memref<32x128xf32, #tpu.memory_space<vmem>>, vector<32x128xf32>
    %5 = arith.subf %3, %4 : vector<32x128xf32>
    %6 = math.absf %5 : vector<32x128xf32>
    %cst = arith.constant -2.000000e+00 : f32
    %7 = vector.broadcast %cst : f32 to vector<32x128xf32>
    %8 = arith.mulf %7, %6 : vector<32x128xf32>
    %9 = math.exp %8 : vector<32x128xf32>
    %10 = math.log1p %9 : vector<32x128xf32>
    %11 = arith.addf %6, %10 : vector<32x128xf32>
    %cst_4 = arith.constant 0.693147182 : f32
    %12 = vector.broadcast %cst_4 : f32 to vector<32x128xf32>
    %13 = arith.subf %11, %12 : vector<32x128xf32>
    %c0_i32_5 = arith.constant 0 : i32
    %14 = arith.cmpi ne, %arg0, %c0_i32_5 : i32
    %15 = arith.extui %14 : i1 to i32
    %c0_i32_6 = arith.constant 0 : i32
    %16 = arith.cmpi ne, %15, %c0_i32_6 : i32
    scf.if %16 {
      %c0_9 = arith.constant 0 : index
      %c0_10 = arith.constant 0 : index
      %20 = vector.load %arg3[%c0_9, %c0_10] : memref<32x128xf32, #tpu.memory_space<vmem>>, vector<32x128xf32>
      %21 = vector.shape_cast %13 : vector<32x128xf32> to vector<1x32x128xf32>
      %cst_11 = arith.constant dense<0.000000e+00> : vector<32x128xf32>
      %22 = vector.multi_reduction <add>, %21, %cst_11 [0] : vector<1x32x128xf32> to vector<32x128xf32>
      %23 = arith.addf %20, %22 : vector<32x128xf32>
      %c0_12 = arith.constant 0 : index
      %c0_13 = arith.constant 0 : index
      %24 = vector.load %arg3[%c0_12, %c0_13] : memref<32x128xf32, #tpu.memory_space<vmem>>, vector<32x128xf32>
      tpu.vector_store %arg3[%c0_12, %c0_13], %23 {strides = array<i32>} : memref<32x128xf32, #tpu.memory_space<vmem>>, vector<32x128xf32>,
    } else {
    }
    %c0_i32_7 = arith.constant 0 : i32
    %17 = arith.cmpi eq, %arg0, %c0_i32_7 : i32
    %18 = arith.extui %17 : i1 to i32
    %c0_i32_8 = arith.constant 0 : i32
    %19 = arith.cmpi ne, %18, %c0_i32_8 : i32
    scf.if %19 {
      %c32_i32 = arith.constant 32 : i32
      %20 = arith.muli %arg0, %c32_i32 : i32
      %21 = tpu.iota {dimensions = array<i32: 0>} : vector<32x128xi32>
      %22 = vector.broadcast %20 : i32 to vector<32x128xi32>
      %23 = arith.addi %22, %21 : vector<32x128xi32>
      %c16_i32 = arith.constant 16 : i32
      %24 = vector.broadcast %c16_i32 : i32 to vector<32x128xi32>
      %25 = arith.cmpi slt, %23, %24 : vector<32x128xi32>
      %cst_9 = arith.constant 0.000000e+00 : f32
      %26 = vector.broadcast %cst_9 : f32 to vector<32x128xf32>
      %27 = arith.select %25, %13, %26 : vector<32x128xi1>, vector<32x128xf32>
      %c0_10 = arith.constant 0 : index
      %c0_11 = arith.constant 0 : index
      %28 = vector.load %arg3[%c0_10, %c0_11] : memref<32x128xf32, #tpu.memory_space<vmem>>, vector<32x128xf32>
      %29 = vector.shape_cast %27 : vector<32x128xf32> to vector<1x32x128xf32>
      %cst_12 = arith.constant dense<0.000000e+00> : vector<32x128xf32>
      %30 = vector.multi_reduction <add>, %29, %cst_12 [0] : vector<1x32x128xf32> to vector<32x128xf32>
      %31 = arith.addf %28, %30 : vector<32x128xf32>
      %c0_13 = arith.constant 0 : index
      %c0_14 = arith.constant 0 : index
      %32 = vector.load %arg3[%c0_13, %c0_14] : memref<32x128xf32, #tpu.memory_space<vmem>>, vector<32x128xf32>
      tpu.vector_store %arg3[%c0_13, %c0_14], %31 {strides = array<i32>} : memref<32x128xf32, #tpu.memory_space<vmem>>, vector<32x128xf32>,
    } else {
    }
    return
  }
  func.func @transform_0(%arg0: i32) -> (i32, i32) {
    %c0_i32 = arith.constant 0 : i32
    %c0_i32_0 = arith.constant 0 : i32
    return %arg0, %c0_i32 : i32, i32
  }
  func.func @transform_1(%arg0: i32) -> (i32, i32) {
    %c0_i32 = arith.constant 0 : i32
    %c0_i32_0 = arith.constant 0 : i32
    return %arg0, %c0_i32 : i32, i32
  }
  func.func @transform_2(%arg0: i32) -> (i32, i32) {
    %c0_i32 = arith.constant 0 : i32
    %c0_i32_0 = arith.constant 0 : i32
    %c0_i32_1 = arith.constant 0 : i32
    return %c0_i32, %c0_i32_0 : i32, i32
  }
}

</mosaic_0001>

<bundles_post_ra>
// kernel: tpu_custom_call.1
= control target key start
LH: loop header
LB: loop body
LE: loop exit
PB: predicated region body
PF: predicated region fallthrough
CT: control target
= control target key end

     0   :  { %7 = vsyncpa [#allocation3], 0  ;;  %s319_s0 = inlined_call_operand.hbm [shape: f32[16,128], index: 0, kind: input, shape index: {}]   ;;  %s320_s1 = inlined_call_operand.hbm [shape: f32[16,128], index: 1, kind: input, shape index: {}]   ;;  %s321_s2 = inlined_call_operand.hbm [shape: f32[32,128], index: 2, kind: output, shape index: {}]  }
   0x1   :  { %8 = vsyncpa [#allocation6], 0 }
   0x2   :  { %9 = vsyncpa [#allocation4], 0 }
   0x3   :  { %14 = vsyncadd [#allocation3], 256  ;;  %s280_s9 = smov [#allocation2]  }
   0x4   :  { %s15_s10 = sshll.u32 %s280_s9, 4  ;;  %s16_s10 = int_to_ptr.vmem [resolvable:$true] %s15_s10 }
   0x5   :  { %s222_s11 = scalar_lea.vmem %s16_s10, 256  ;;  %s226_s12 = scalar_lea.vmem %s16_s10, 512 }
   0x6   :  { %p223_p0 = scmp.ne.s32.totalorder %s16_s10, %s222_s11  ;;  %p227_p1 = scmp.lt.s32.totalorder %s16_s10, %s16_s10 }
   0x7   :  { %p228_p2 = scmp.lt.s32.totalorder %s226_s12, %s222_s11 }
   0x9   :  { %p229_p3 = por %p228_p2, %p227_p1 }
   0xb   :  { %p230_p4 = pnand %p229_p3, %p223_p0 }
   0xd   :  { %233 = shalt.err (!%p230_p4)
}
   0xe   :  { %s281_s13 = smov 128   ;;  %s282_s14 = smov 8  }
   0xf   :  { %21 = dma.hbm_to_vmem [thread:$0]  %s319_s0, 256, %s16_s10, [#allocation3], %s281_s13, %s281_s13, %s282_s14  }
  0x10   :  { %26 = vsyncadd [#allocation6], 256  ;;  %s283_s17 = smov [#allocation5]  }
  0x11   :  { %s27_s18 = sshll.u32 %s283_s17, 4  ;;  %s28_s18 = int_to_ptr.vmem [resolvable:$true] %s27_s18 }
  0x12   :  { %s242_s19 = scalar_lea.vmem %s28_s18, 256  ;;  %s246_s20 = scalar_lea.vmem %s28_s18, 512 }
  0x13   :  { %p243_p5 = scmp.ne.s32.totalorder %s28_s18, %s242_s19  ;;  %p247_p6 = scmp.lt.s32.totalorder %s28_s18, %s28_s18 }
  0x14   :  { %p248_p7 = scmp.lt.s32.totalorder %s246_s20, %s242_s19 }
  0x16   :  { %p249_p8 = por %p248_p7, %p247_p6 }
  0x18   :  { %p250_p9 = pnand %p249_p8, %p243_p5 }
  0x1a   :  { %253 = shalt.err (!%p250_p9)
}
  0x1b   :  { %33 = dma.hbm_to_vmem [thread:$0]  %s320_s1, 256, %s28_s18, [#allocation6], %s281_s13, %s281_s13, %s282_s14  }
  0x1c   :  { %274 = dma.done.wait [#allocation3], 512  }
  0x1d   :  { %275 = vsyncadd [#allocation3], 4294966784 }
  0x1e   :  { %276 = dma.done.wait [#allocation6], 512  }
  0x1f   :  { %277 = vsyncadd [#allocation6], 4294966784  ;;  %v284_v0 = vmov 0.0   ;;  %v48_v1 = vld [vmem:[#allocation2] sm:$0xff]  ;;  %v49_v3 = vld [vmem:[#allocation2 + $0x8] sm:$0xff]  ;;  %s285_s0 = smov [#allocation7]  }
  0x20   :  { %176 = vst [vmem:[#allocation7 + $0x10] sm:$0xff] %v284_v0  ;;  %177 = vst [vmem:[#allocation7 + $0x18] sm:$0xff] %v284_v0  ;;  %v52_v2 = vld [vmem:[#allocation5] sm:$0xff]  ;;  %v53_v5 = vld [vmem:[#allocation5 + $0x8] sm:$0xff]  ;;  %s183_s1 = sshll.u32 %s285_s0, 4  ;;  %s184_s1 = int_to_ptr.vmem [resolvable:$true] %s183_s1 }
  0x21   :  { %v56_v4 = vsub.f32 %v48_v1, %v52_v2  ;;  %v57_v6 = vsub.f32 %v49_v3, %v53_v5  ;;  %s254_s23 = scalar_lea.vmem %s184_s1, 512  ;;  %p259_p11 = scmp.lt.s32.totalorder %s184_s1, %s184_s1 }
  0x22   :  { %p255_p10 = scmp.ne.s32.totalorder %s184_s1, %s254_s23  ;;  %p260_p12 = scmp.lt.s32.totalorder %s254_s23, %s254_s23 }
  0x23   :  { %v60_v7 = vand.u32 2147483647, %v56_v4  ;;  %v61_v8 = vand.u32 2147483647, %v57_v6 }
  0x24   :  { %p261_p13 = por %p260_p12, %p259_p11 }
  0x25   :  { %v64_v9 = vmul.f32 -2.0, %v60_v7  ;;  %v65_v10 = vmul.f32 -2.0, %v61_v8 }
  0x26   :  { %p262_p0 = pnand %p261_p13, %p255_p10 }
  0x27   :  { %v68_v11 = vmul.f32 1.442695, %v64_v9  ;;  %v70_v12 = vmul.f32 1.442695, %v65_v10 }
  0x29   :  { %206 = vpow2.f32 %v68_v11 }
  0x2a   :  { %208 = vpow2.f32 %v70_v12 }
  0x36   :  { %v207_v13 = vpop.eup %206 }
  0x37   :  { %v209_v14 = vpop.eup %208  ;;  %v76_v15 = vadd.f32 1.0, %v207_v13  ;;  %v79_v17 = vmul.f32 -0.5, %v207_v13  ;;  %v82_v20 = vand.u32 2147483647, %v207_v13 }
  0x38   :  { %v85_v16 = vadd.f32 1.0, %v209_v14  ;;  %v88_v18 = vmul.f32 -0.5, %v209_v14  ;;  %v91_v22 = vand.u32 2147483647, %v209_v14 }
  0x39   :  { %210 = vlog2.f32 %v76_v15  ;;  %v80_v19 = vadd.f32 1.0, %v79_v17  ;;  %vm83_vm0 = vcmp.lt.f32.partialorder %v82_v20, 0.0004427343 }
  0x3a   :  { %212 = vlog2.f32 %v85_v16  ;;  %v89_v21 = vadd.f32 1.0, %v88_v18  ;;  %vm92_vm1 = vcmp.lt.f32.partialorder %v91_v22, 0.0004427343 }
  0x3b   :  { %v81_v23 = vmul.f32 %v207_v13, %v80_v19 }
  0x3c   :  { %v90_v25 = vmul.f32 %v209_v14, %v89_v21 }
  0x46   :  { %v211_v24 = vpop.eup %210 }
  0x47   :  { %v213_v26 = vpop.eup %212  ;;  %v78_v27 = vmul.f32 0.6931472, %v211_v24 }
  0x48   :  { %v87_v28 = vmul.f32 0.6931472, %v213_v26 }
  0x49   :  { %v84_v29 = vsel %vm83_vm0, %v81_v23, %v78_v27 }
  0x4a   :  { %v112_v30 = vadd.f32 %v84_v29, %v60_v7  ;;  %v93_v31 = vsel %vm92_vm1, %v90_v25, %v87_v28 }
  0x4b   :  { %v113_v32 = vadd.f32 %v93_v31, %v61_v8 }
  0x4c   :  { %v196_v33 = vadd.f32 -0.6931472, %v112_v30 }
  0x4d   :  { %v197_v34 = vadd.f32 -0.6931472, %v113_v32 }
  0x4e   :  { %174 = vst [vmem:[#allocation7] sm:$0xff] %v196_v33 }
  0x4f   :  { %175 = vst [vmem:[#allocation7 + $0x8] sm:$0xff] %v197_v34 }
  0x50   :  { %265 = shalt.err (!%p262_p0)
}
  0x51   :  { %189 = dma.vmem_to_hbm [thread:$0]  %s184_s1, 512, %s321_s2, [#allocation4], %s281_s13, %s281_s13, %s282_s14  }
  0x52   :  { %278 = dma.done.wait [#allocation4], 512  }
  0x53   :  { %279 = vsyncadd [#allocation4], 4294966784 }
  0x54   :  { %193 = vsyncpa [#allocation3], 1 }
  0x55   :  { %194 = vsyncpa [#allocation6], 1 }
  0x56   :  { %195 = vsyncpa [#allocation4], 1 }

</bundles_post_ra>
